<compile_context>
chip_gen: v7x
topology: tpu7x:2x2x1
jax: 0.10.0
libtpu: 0.0.40
codegen_flags: <defaults>
</compile_context>

<pallas_src>
import math

import jax
import jax.numpy as jnp
from jax.experimental import pallas as pl
from jax.experimental.pallas import tpu as pltpu

LEAKY_SLOPE = 0.01          # nn.LeakyReLU() default
BN_EPS = 1e-5               # nn.BatchNorm1d default


def _pick_vmem_limit():
    """~40 MiB on v7x (64 MiB VMEM), ~100 MiB on v5e/v6e (128 MiB VMEM)."""
    cap = 64 * 1024 * 1024
    try:
        cap = int(pltpu.get_tpu_info().vmem_capacity_bytes)
    except Exception:
        pass
    lim = min(cap - 24 * 1024 * 1024, 100 * 1024 * 1024)
    return int(max(lim, 32 * 1024 * 1024))


VMEM_LIMIT = _pick_vmem_limit()


def _leaky(v):
    return jnp.where(v >= 0, v, LEAKY_SLOPE * v)


# --------------------------------------------------------------------------
# Fused stem: (conv1_1+bn1_1+relu+maxpool) || (conv2+bn2+relu+maxpool) + concat
# One merged block-diagonal weight, one lane-dense (L/2, 128) store per batch.
# Input arrives pair-packed: row j = [x[2j] | x[2j+1]]  (free host reshape).
# --------------------------------------------------------------------------
def make_stem_kernel(H, Cin):
    def kernel(xp_ref, w_ref, sc_ref, sh_ref, o_ref, pad_ref):
        xp = xp_ref[...]                                         # (H, 2*Cin) f32
        # stage pairs into padded f32 buffer; only the 2 halo rows are zeroed
        pad_ref[0:1, :] = jnp.zeros((1, 2 * Cin), jnp.float32)
        pad_ref[H + 1:H + 2, :] = jnp.zeros((1, 2 * Cin), jnp.float32)
        pad_ref[1:H + 1, :] = xp

        x0 = xp[:, 0:Cin].astype(jnp.bfloat16)                   # x[2j]
        xp1 = xp[:, Cin:2 * Cin].astype(jnp.bfloat16)            # x[2j+1]
        xm1 = pad_ref[0:H, Cin:2 * Cin].astype(jnp.bfloat16)     # x[2j-1] (0 at j=0)
        x2 = pad_ref[2:H + 2, 0:Cin].astype(jnp.bfloat16)        # x[2j+2] (0 at j=H-1)

        w0, w1, w2 = w_ref[0], w_ref[1], w_ref[2]
        # conv output at even positions (2j) and odd positions (2j+1)
        ye = (jnp.dot(xm1, w0, preferred_element_type=jnp.float32)
              + jnp.dot(x0, w1, preferred_element_type=jnp.float32)
              + jnp.dot(xp1, w2, preferred_element_type=jnp.float32))
        yo = (jnp.dot(x0, w0, preferred_element_type=jnp.float32)
              + jnp.dot(xp1, w1, preferred_element_type=jnp.float32)
              + jnp.dot(x2, w2, preferred_element_type=jnp.float32))
        sc = sc_ref[...]
        sh = sh_ref[...]
        ye = _leaky(ye * sc + sh)                                 # bn + LeakyReLU
        yo = _leaky(yo * sc + sh)
        # MaxPool1d(2) == elementwise max of even/odd conv outputs; one 128-wide store
        o_ref[...] = jnp.maximum(ye, yo).astype(o_ref.dtype)

    return kernel


def stem_call(params, x1, x2, B, L):
    C1, C2 = x1.shape[1], x2.shape[1]
    assert L % 2 == 0, "stem maxpool expects an even sequence length"
    H = L // 2
    Cin = C1 + C2
    # NCL -> NLC, channel concat, then free row-major pairing reshape (L,C)->(L/2,2C)
    xc = jnp.concatenate(
        [jnp.transpose(x1, (0, 2, 1)), jnp.transpose(x2, (0, 2, 1))], axis=-1
    ).astype(jnp.float32)
    xp = xc.reshape(B, H, 2 * Cin)
    w, sc, sh = params["stem"]

    flops = 2 * B * L * (3 * Cin) * 128
    bytes_acc = (B * L * Cin * 4 + 3 * Cin * 128 * 2 + 2 * 128 * 4
                 + B * H * 128 * 2)

    return pl.pallas_call(
        make_stem_kernel(H, Cin),
        out_shape=jax.ShapeDtypeStruct((B, H, 128), jnp.bfloat16),
        grid=(B,),
        in_specs=[
            pl.BlockSpec((None, H, 2 * Cin), lambda b: (b, 0, 0)),
            pl.BlockSpec((3, Cin, 128), lambda b: (0, 0, 0)),
            pl.BlockSpec((1, 128), lambda b: (0, 0)),
            pl.BlockSpec((1, 128), lambda b: (0, 0)),
        ],
        out_specs=pl.BlockSpec((None, H, 128), lambda b: (b, 0, 0)),
        scratch_shapes=[pltpu.VMEM((H + 2, 2 * Cin), jnp.float32)],
        compiler_params=pltpu.CompilerParams(
            dimension_semantics=("parallel",), vmem_limit_bytes=VMEM_LIMIT),
        cost_estimate=pl.CostEstimate(flops=flops, transcendentals=0,
                                      bytes_accessed=bytes_acc),
    )(xp, w, sc, sh)


# --------------------------------------------------------------------------
# Fused BasicBlock:
#   conv1(k3, stride, pad1)+bn1+leaky -> conv2(k3, 1, pad1)+bn2
#   -> + (downsample(x) | x) -> leaky
# k=3 convs = three accumulating K=C dots on row-shifted padded views.
# stride=2 taps come from lane slices of the pair-packed input (no strided reads).
# --------------------------------------------------------------------------
def make_block_kernel(L_in, C_in, P, stride, has_ds):
    L_out = L_in // stride

    def kernel(*refs):
        if has_ds:
            (x_ref, w1_ref, s1_ref, sh1_ref, w2_ref, s2_ref, sh2_ref,
             wd_ref, sd_ref, shd_ref, o_ref, pad1_ref, pad2_ref) = refs
        else:
            (x_ref, w1_ref, s1_ref, sh1_ref, w2_ref, s2_ref, sh2_ref,
             o_ref, pad1_ref, pad2_ref) = refs

        # --------------- conv1 taps (kernel_size=3, padding=1) ---------------
        if stride == 1:
            x = x_ref[...]                                        # (L, C_in) bf16
            pad1_ref[0:1, :] = jnp.zeros((1, C_in), jnp.float32)
            pad1_ref[L_in + 1:L_in + 2, :] = jnp.zeros((1, C_in), jnp.float32)
            pad1_ref[1:L_in + 1, :] = x.astype(jnp.float32)
            xm1 = pad1_ref[0:L_out, :].astype(jnp.bfloat16)       # x[i-1]
            x0 = x                                                # x[i]
            xp1 = pad1_ref[2:L_out + 2, :].astype(jnp.bfloat16)   # x[i+1]
        else:
            xv = x_ref[...]                                       # (L_out, 2*C_in) bf16 pairs
            x0 = xv[:, 0:C_in]                                    # x[2j]
            xp1 = xv[:, C_in:2 * C_in]                            # x[2j+1]
            pad1_ref[0:1, :] = jnp.zeros((1, C_in), jnp.float32)
            pad1_ref[1:L_out + 1, :] = xp1.astype(jnp.float32)
            xm1 = pad1_ref[0:L_out, :].astype(jnp.bfloat16)       # x[2j-1] (0 at j=0)

        h = (jnp.dot(xm1, w1_ref[0], preferred_element_type=jnp.float32)
             + jnp.dot(x0, w1_ref[1], preferred_element_type=jnp.float32)
             + jnp.dot(xp1, w1_ref[2], preferred_element_type=jnp.float32))
        h = _leaky(h * s1_ref[...] + sh1_ref[...])                # bn1 + LeakyReLU (f32)

        # --------------- conv2 (stride 1) + bn2 ---------------
        pad2_ref[0:1, :] = jnp.zeros((1, P), jnp.float32)
        pad2_ref[L_out + 1:L_out + 2, :] = jnp.zeros((1, P), jnp.float32)
        pad2_ref[1:L_out + 1, :] = h
        hm1 = pad2_ref[0:L_out, :].astype(jnp.bfloat16)
        hp1 = pad2_ref[2:L_out + 2, :].astype(jnp.bfloat16)
        y = (jnp.dot(hm1, w2_ref[0], preferred_element_type=jnp.float32)
             + jnp.dot(h.astype(jnp.bfloat16), w2_ref[1],
                       preferred_element_type=jnp.float32)
             + jnp.dot(hp1, w2_ref[2], preferred_element_type=jnp.float32))
        y = y * s2_ref[...] + sh2_ref[...]

        # --------------- residual ---------------
        if has_ds:
            r = jnp.dot(x0, wd_ref[...], preferred_element_type=jnp.float32)
            r = r * sd_ref[...] + shd_ref[...]
        else:
            r = x0.astype(jnp.float32)                            # identity
        o_ref[...] = _leaky(y + r).astype(o_ref.dtype)            # lane-dense bf16 store

    return kernel


def block_call(x, B, L_in, p):
    # x: (B, L_in, C_in) bf16
    C_in = x.shape[-1]
    stride = p["stride"]
    P = p["planes"]
    has_ds = p["downsample"] is not None

    if stride == 2:
        # TODO(synk): odd lengths with stride=2 (PyTorch floor semantics) unsupported.
        assert L_in % 2 == 0
        L_out = L_in // 2
        x_in = x.reshape(B, L_out, 2 * C_in)       # free row-major pairing reshape
        x_spec = pl.BlockSpec((None, L_out, 2 * C_in), lambda b: (b, 0, 0))
        pad1_shape = (L_out + 1, C_in)
    else:
        L_out = L_in
        x_in = x
        x_spec = pl.BlockSpec((None, L_in, C_in), lambda b: (b, 0, 0))
        pad1_shape = (L_in + 2, C_in)

    args = [x_in, p["w1"], p["s1"], p["sh1"], p["w2"], p["s2"], p["sh2"]]
    in_specs = [
        x_spec,
        pl.BlockSpec((3, C_in, P), lambda b: (0, 0, 0)),
        pl.BlockSpec((1, P), lambda b: (0, 0)),
        pl.BlockSpec((1, P), lambda b: (0, 0)),
        pl.BlockSpec((3, P, P), lambda b: (0, 0, 0)),
        pl.BlockSpec((1, P), lambda b: (0, 0)),
        pl.BlockSpec((1, P), lambda b: (0, 0)),
    ]
    flops = 2 * B * L_out * (3 * C_in) * P + 2 * B * L_out * (3 * P) * P
    bytes_acc = (B * L_in * C_in * 2 + 3 * C_in * P * 2 + 3 * P * P * 2
                 + 4 * P * 4 + B * L_out * P * 2)
    if has_ds:
        d = p["downsample"]
        args += [d["w"], d["s"], d["sh"]]
        in_specs += [pl.BlockSpec((C_in, P), lambda b: (0, 0)),
                     pl.BlockSpec((1, P), lambda b: (0, 0)),
                     pl.BlockSpec((1, P), lambda b: (0, 0))]
        flops += 2 * B * L_out * C_in * P
        bytes_acc += C_in * P * 2 + 2 * P * 4

    out = pl.pallas_call(
        make_block_kernel(L_in, C_in, P, stride, has_ds),
        out_shape=jax.ShapeDtypeStruct((B, L_out, P), jnp.bfloat16),
        grid=(B,),
        in_specs=in_specs,
        out_specs=pl.BlockSpec((None, L_out, P), lambda b: (b, 0, 0)),
        scratch_shapes=[pltpu.VMEM(pad1_shape, jnp.float32),       # conv1 halo staging
                        pltpu.VMEM((L_out + 2, P), jnp.float32)],  # conv2 halo staging
        compiler_params=pltpu.CompilerParams(
            dimension_semantics=("parallel",), vmem_limit_bytes=VMEM_LIMIT),
        cost_estimate=pl.CostEstimate(flops=flops, transcendentals=0,
                                      bytes_accessed=bytes_acc),
    )(*args)
    return out, L_out


# --------------------------------------------------------------------------
# Parameter construction (matches module __init__ shapes; BN in inference mode)
# --------------------------------------------------------------------------
def fused_conv_bn(key, c_in, c_out, k, bias=True, cast_bf16=True):
    """Conv weight (k, C_in, C_out) + BN folded to (scale, shift); conv bias folded in."""
    kw, kb = jax.random.split(key)
    std = math.sqrt(2.0 / ((c_in + c_out) * k))              # xavier_normal
    w = std * jax.random.normal(kw, (k, c_in, c_out), jnp.float32)
    # TODO(synk): BatchNorm folded with inference-mode default running stats
    # (mean=0, var=1, gamma=1, beta=0); training-mode batch statistics not reproduced.
    scale = jnp.ones((c_out,), jnp.float32) / jnp.sqrt(1.0 + BN_EPS)
    shift = jnp.zeros((c_out,), jnp.float32)
    if bias:
        bound = 1.0 / math.sqrt(c_in * k)
        b = jax.random.uniform(kb, (c_out,), jnp.float32, -bound, bound)
        shift = shift + b * scale                            # fold conv bias into BN shift
    if cast_bf16:
        w = w.astype(jnp.bfloat16)
    return w, scale.reshape(1, c_out), shift.reshape(1, c_out)


def make_block_params(key, inplanes, planes, stride):
    k1, k2, k3 = jax.random.split(key, 3)
    w1, s1, sh1 = fused_conv_bn(k1, inplanes, planes, 3, bias=True)
    w2, s2, sh2 = fused_conv_bn(k2, planes, planes, 3, bias=True)
    p = dict(w1=w1, s1=s1, sh1=sh1, w2=w2, s2=s2, sh2=sh2,
             stride=stride, planes=planes, downsample=None)
    if stride != 1 or inplanes != planes:
        wd, sd, shd = fused_conv_bn(k3, inplanes, planes, 1, bias=False)
        p["downsample"] = dict(w=wd.reshape(inplanes, planes), s=sd, sh=shd)
    return p


def make_model_params(key, layers, inchannel1, inchannel2):
    keys = iter(jax.random.split(key, 64))
    params = {}
    # stem: block-diagonal merged weight for both branches -> single 128-lane output
    w1, s1, sh1 = fused_conv_bn(next(keys), inchannel1, 64, 3, bias=True, cast_bf16=False)
    w2, s2, sh2 = fused_conv_bn(next(keys), inchannel2, 64, 3, bias=True, cast_bf16=False)
    cin = inchannel1 + inchannel2
    wst = jnp.zeros((3, cin, 128), jnp.float32)
    wst = wst.at[:, :inchannel1, :64].set(w1)
    wst = wst.at[:, inchannel1:, 64:].set(w2)
    params["stem"] = (wst.astype(jnp.bfloat16),
                      jnp.concatenate([s1, s2], axis=1),
                      jnp.concatenate([sh1, sh2], axis=1))
    # NOTE: conv1_2/bn1_2, fc and dropout exist in __init__ but are unused in forward().
    inplanes = 128
    stages = []
    for planes, n_blocks, stride in zip((128, 256, 512, 1024), layers, (1, 2, 2, 2)):
        stage = [make_block_params(next(keys), inplanes, planes, stride)]
        inplanes = planes
        for _ in range(1, n_blocks):
            stage.append(make_block_params(next(keys), inplanes, planes, 1))
        stages.append(stage)
    params["layers"] = stages
    return params


# --------------------------------------------------------------------------
# Forward pass
# --------------------------------------------------------------------------
def model_forward(params, x1, x2):
    B, _, L = x1.shape
    x = stem_call(params, x1, x2, B, L)            # (B, L//2, 128) bf16
    Lc = L // 2
    for stage in params["layers"]:
        for blk in stage:
            x, Lc = block_call(x, B, Lc, blk)
    # AdaptiveAvgPool1d(1) + flatten — trivial reduction, plain JAX.
    return jnp.mean(x.astype(jnp.float32), axis=1)  # (B, 1024)


# --------------------------------------------------------------------------
if __name__ == "__main__":
    key = jax.random.PRNGKey(0)
    kp, k1, k2 = jax.random.split(key, 3)

    layers = [1, 1, 1, 1]          # one BasicBlock per stage (small test config)
    inchannel1, inchannel2 = 4, 6
    B, L = 2, 16

    params = make_model_params(kp, layers, inchannel1, inchannel2)
    x1 = jax.random.normal(k1, (B, inchannel1, L), jnp.float32)
    x2 = jax.random.normal(k2, (B, inchannel2, L), jnp.float32)

    out = model_forward(params, x1, x2)
    out = jax.block_until_ready(out)
    assert out.shape == (B, 1024), out.shape
    assert bool(jnp.all(jnp.isfinite(out)))
    print("KERNEL_OK")
</pallas_src>

<mosaic_0001>
module attributes {stable_mosaic.version = 11 : i64} {
  func.func @kernel(%arg0: i32, %arg1: memref<1x8x20xf32, #tpu.memory_space<vmem>>, %arg2: memref<3x10x128xbf16, #tpu.memory_space<vmem>>, %arg3: memref<1x128xf32, #tpu.memory_space<vmem>>, %arg4: memref<1x128xf32, #tpu.memory_space<vmem>>, %arg5: memref<1x8x128xbf16, #tpu.memory_space<vmem>>, %arg6: memref<10x20xf32, #tpu.memory_space<vmem>>) attributes {dimension_semantics = [#tpu.dimension_semantics<parallel>], iteration_bounds = array<i64: 2>, scalar_prefetch = 0 : i64, scratch_operands = 1 : i64, tpu.core_type = #tpu.core_type<tc>, window_params = [{transform_indices = @transform_0, window_bounds = array<i64: 1, 8, 20>}, {pipeline_mode = #tpu.pipeline_mode<synchronous>, transform_indices = @transform_1, window_bounds = array<i64: 3, 10, 128>}, {pipeline_mode = #tpu.pipeline_mode<synchronous>, transform_indices = @transform_2, window_bounds = array<i64: 1, 128>}, {pipeline_mode = #tpu.pipeline_mode<synchronous>, transform_indices = @transform_3, window_bounds = array<i64: 1, 128>}, {transform_indices = @transform_4, window_bounds = array<i64: 1, 8, 128>}]} {
    %c0 = arith.constant 0 : index
    %c0_0 = arith.constant 0 : index
    %c0_1 = arith.constant 0 : index
    %0 = vector.load %arg1[%c0, %c0_0, %c0_1] : memref<1x8x20xf32, #tpu.memory_space<vmem>>, vector<1x8x20xf32>
    %1 = vector.shape_cast %0 : vector<1x8x20xf32> to vector<8x20xf32>
    %cst = arith.constant 0.000000e+00 : f32
    %2 = vector.broadcast %cst : f32 to vector<1x20xf32>
    %c0_2 = arith.constant 0 : index
    %c0_3 = arith.constant 0 : index
    %3 = vector.load %arg6[%c0_2, %c0_3] : memref<10x20xf32, #tpu.memory_space<vmem>>, vector<1x20xf32>
    tpu.vector_store %arg6[%c0_2, %c0_3], %2 {strides = array<i32>} : memref<10x20xf32, #tpu.memory_space<vmem>>, vector<1x20xf32>,
    %cst_4 = arith.constant 0.000000e+00 : f32
    %4 = vector.broadcast %cst_4 : f32 to vector<1x20xf32>
    %c9 = arith.constant 9 : index
    %c0_5 = arith.constant 0 : index
    %5 = vector.load %arg6[%c9, %c0_5] : memref<10x20xf32, #tpu.memory_space<vmem>>, vector<1x20xf32>
    tpu.vector_store %arg6[%c9, %c0_5], %4 {strides = array<i32>} : memref<10x20xf32, #tpu.memory_space<vmem>>, vector<1x20xf32>,
    %c1 = arith.constant 1 : index
    %c0_6 = arith.constant 0 : index
    %6 = vector.load %arg6[%c1, %c0_6] : memref<10x20xf32, #tpu.memory_space<vmem>>, vector<8x20xf32>
    tpu.vector_store %arg6[%c1, %c0_6], %1 {strides = array<i32>} : memref<10x20xf32, #tpu.memory_space<vmem>>, vector<8x20xf32>,
    %7 = vector.extract_strided_slice %1 {offsets = [0, 0], sizes = [8, 10], strides = [1, 1]} : vector<8x20xf32> to vector<8x10xf32>
    %8 = arith.truncf %7 : vector<8x10xf32> to vector<8x10xbf16>
    %9 = vector.extract_strided_slice %1 {offsets = [0, 10], sizes = [8, 10], strides = [1, 1]} : vector<8x20xf32> to vector<8x10xf32>
    %10 = arith.truncf %9 : vector<8x10xf32> to vector<8x10xbf16>
    %c0_7 = arith.constant 0 : index
    %c10 = arith.constant 10 : index
    %11 = vector.load %arg6[%c0_7, %c10] : memref<10x20xf32, #tpu.memory_space<vmem>>, vector<8x10xf32>
    %12 = arith.truncf %11 : vector<8x10xf32> to vector<8x10xbf16>
    %c2 = arith.constant 2 : index
    %c0_8 = arith.constant 0 : index
    %13 = vector.load %arg6[%c2, %c0_8] : memref<10x20xf32, #tpu.memory_space<vmem>>, vector<8x10xf32>
    %14 = arith.truncf %13 : vector<8x10xf32> to vector<8x10xbf16>
    %c0_9 = arith.constant 0 : index
    %c0_10 = arith.constant 0 : index
    %c0_11 = arith.constant 0 : index
    %15 = vector.load %arg2[%c0_9, %c0_10, %c0_11] : memref<3x10x128xbf16, #tpu.memory_space<vmem>>, vector<1x10x128xbf16>
    %16 = vector.shape_cast %15 : vector<1x10x128xbf16> to vector<10x128xbf16>
    %c1_12 = arith.constant 1 : index
    %c0_13 = arith.constant 0 : index
    %c0_14 = arith.constant 0 : index
    %17 = vector.load %arg2[%c1_12, %c0_13, %c0_14] : memref<3x10x128xbf16, #tpu.memory_space<vmem>>, vector<1x10x128xbf16>
    %18 = vector.shape_cast %17 : vector<1x10x128xbf16> to vector<10x128xbf16>
    %c2_15 = arith.constant 2 : index
    %c0_16 = arith.constant 0 : index
    %c0_17 = arith.constant 0 : index
    %19 = vector.load %arg2[%c2_15, %c0_16, %c0_17] : memref<3x10x128xbf16, #tpu.memory_space<vmem>>, vector<1x10x128xbf16>
    %20 = vector.shape_cast %19 : vector<1x10x128xbf16> to vector<10x128xbf16>
    %cst_18 = arith.constant dense<0.000000e+00> : vector<8x128xf32>
    %21 = tpu.matmul %12, %16, %cst_18 {dimension_numbers = #tpu.dot_dimension_numbers<[1], [0], [0], [1], [0, 0, 1, 1], [], []>} : vector<8x10xbf16>, vector<10x128xbf16>, vector<8x128xf32> -> vector<8x128xf32>
    %cst_19 = arith.constant dense<0.000000e+00> : vector<8x128xf32>
    %22 = tpu.matmul %8, %18, %cst_19 {dimension_numbers = #tpu.dot_dimension_numbers<[1], [0], [0], [1], [0, 0, 1, 1], [], []>} : vector<8x10xbf16>, vector<10x128xbf16>, vector<8x128xf32> -> vector<8x128xf32>
    %23 = arith.addf %21, %22 : vector<8x128xf32>
    %cst_20 = arith.constant dense<0.000000e+00> : vector<8x128xf32>
    %24 = tpu.matmul %10, %20, %cst_20 {dimension_numbers = #tpu.dot_dimension_numbers<[1], [0], [0], [1], [0, 0, 1, 1], [], []>} : vector<8x10xbf16>, vector<10x128xbf16>, vector<8x128xf32> -> vector<8x128xf32>
    %25 = arith.addf %23, %24 : vector<8x128xf32>
    %cst_21 = arith.constant dense<0.000000e+00> : vector<8x128xf32>
    %26 = tpu.matmul %8, %16, %cst_21 {dimension_numbers = #tpu.dot_dimension_numbers<[1], [0], [0], [1], [0, 0, 1, 1], [], []>} : vector<8x10xbf16>, vector<10x128xbf16>, vector<8x128xf32> -> vector<8x128xf32>
    %cst_22 = arith.constant dense<0.000000e+00> : vector<8x128xf32>
    %27 = tpu.matmul %10, %18, %cst_22 {dimension_numbers = #tpu.dot_dimension_numbers<[1], [0], [0], [1], [0, 0, 1, 1], [], []>} : vector<8x10xbf16>, vector<10x128xbf16>, vector<8x128xf32> -> vector<8x128xf32>
    %28 = arith.addf %26, %27 : vector<8x128xf32>
    %cst_23 = arith.constant dense<0.000000e+00> : vector<8x128xf32>
    %29 = tpu.matmul %14, %20, %cst_23 {dimension_numbers = #tpu.dot_dimension_numbers<[1], [0], [0], [1], [0, 0, 1, 1], [], []>} : vector<8x10xbf16>, vector<10x128xbf16>, vector<8x128xf32> -> vector<8x128xf32>
    %30 = arith.addf %28, %29 : vector<8x128xf32>
    %c0_24 = arith.constant 0 : index
    %c0_25 = arith.constant 0 : index
    %31 = vector.load %arg3[%c0_24, %c0_25] : memref<1x128xf32, #tpu.memory_space<vmem>>, vector<1x128xf32>
    %c0_26 = arith.constant 0 : index
    %c0_27 = arith.constant 0 : index
    %32 = vector.load %arg4[%c0_26, %c0_27] : memref<1x128xf32, #tpu.memory_space<vmem>>, vector<1x128xf32>
    %33 = vector.broadcast %31 : vector<1x128xf32> to vector<8x128xf32>
    %34 = arith.mulf %25, %33 : vector<8x128xf32>
    %35 = vector.broadcast %32 : vector<1x128xf32> to vector<8x128xf32>
    %36 = arith.addf %34, %35 : vector<8x128xf32>
    %cst_28 = arith.constant 0.000000e+00 : f32
    %37 = vector.broadcast %cst_28 : f32 to vector<8x128xf32>
    %38 = arith.cmpf oge, %36, %37 : vector<8x128xf32>
    %cst_29 = arith.constant 0.00999999977 : f32
    %39 = vector.broadcast %cst_29 : f32 to vector<8x128xf32>
    %40 = arith.mulf %39, %36 : vector<8x128xf32>
    %41 = arith.select %38, %36, %40 : vector<8x128xi1>, vector<8x128xf32>
    %42 = vector.broadcast %31 : vector<1x128xf32> to vector<8x128xf32>
    %43 = arith.mulf %30, %42 : vector<8x128xf32>
    %44 = vector.broadcast %32 : vector<1x128xf32> to vector<8x128xf32>
    %45 = arith.addf %43, %44 : vector<8x128xf32>
    %cst_30 = arith.constant 0.000000e+00 : f32
    %46 = vector.broadcast %cst_30 : f32 to vector<8x128xf32>
    %47 = arith.cmpf oge, %45, %46 : vector<8x128xf32>
    %cst_31 = arith.constant 0.00999999977 : f32
    %48 = vector.broadcast %cst_31 : f32 to vector<8x128xf32>
    %49 = arith.mulf %48, %45 : vector<8x128xf32>
    %50 = arith.select %47, %45, %49 : vector<8x128xi1>, vector<8x128xf32>
    %51 = arith.maximumf %41, %50 : vector<8x128xf32>
    %52 = arith.truncf %51 : vector<8x128xf32> to vector<8x128xbf16>
    %c0_32 = arith.constant 0 : index
    %c0_33 = arith.constant 0 : index
    %c0_34 = arith.constant 0 : index
    %53 = vector.load %arg5[%c0_32, %c0_33, %c0_34] : memref<1x8x128xbf16, #tpu.memory_space<vmem>>, vector<1x8x128xbf16>
    %54 = vector.shape_cast %53 : vector<1x8x128xbf16> to vector<8x128xbf16>
    %55 = vector.shape_cast %52 : vector<8x128xbf16> to vector<1x8x128xbf16>
    tpu.vector_store %arg5[%c0_32, %c0_33, %c0_34], %55 {strides = array<i32>} : memref<1x8x128xbf16, #tpu.memory_space<vmem>>, vector<1x8x128xbf16>,
    return
  }
  func.func @transform_0(%arg0: i32) -> (i32, i32, i32) {
    %c0_i32 = arith.constant 0 : i32
    %c0_i32_0 = arith.constant 0 : i32
    %c0_i32_1 = arith.constant 0 : i32
    return %arg0, %c0_i32, %c0_i32_0 : i32, i32, i32
  }
  func.func @transform_1(%arg0: i32) -> (i32, i32, i32) {
    %c0_i32 = arith.constant 0 : i32
    %c0_i32_0 = arith.constant 0 : i32
    %c0_i32_1 = arith.constant 0 : i32
    %c0_i32_2 = arith.constant 0 : i32
    return %c0_i32, %c0_i32_0, %c0_i32_1 : i32, i32, i32
  }
  func.func @transform_2(%arg0: i32) -> (i32, i32) {
    %c0_i32 = arith.constant 0 : i32
    %c0_i32_0 = arith.constant 0 : i32
    %c0_i32_1 = arith.constant 0 : i32
    return %c0_i32, %c0_i32_0 : i32, i32
  }
  func.func @transform_3(%arg0: i32) -> (i32, i32) {
    %c0_i32 = arith.constant 0 : i32
    %c0_i32_0 = arith.constant 0 : i32
    %c0_i32_1 = arith.constant 0 : i32
    return %c0_i32, %c0_i32_0 : i32, i32
  }
  func.func @transform_4(%arg0: i32) -> (i32, i32, i32) {
    %c0_i32 = arith.constant 0 : i32
    %c0_i32_0 = arith.constant 0 : i32
    %c0_i32_1 = arith.constant 0 : i32
    return %arg0, %c0_i32, %c0_i32_0 : i32, i32, i32
  }
}

</mosaic_0001>

<bundles_post_ra>
// kernel: tpu_custom_call.1
= control target key start
LH: loop header
LB: loop body
LE: loop exit
PB: predicated region body
PF: predicated region fallthrough
CT: control target
= control target key end

     0   :  { %9 = vsyncpa [#allocation4], 0  ;;  %s956_s0 = inlined_call_operand.vmem [shape: f32[2,8,20], index: 0, kind: input, shape index: {}]   ;;  %s957_s1 = inlined_call_operand.vmem [shape: bf16[3,10,128], index: 1, kind: input, shape index: {}]   ;;  %s958_s2 = inlined_call_operand.vmem [shape: f32[1,128], index: 2, kind: input, shape index: {}]   ;;  %s959_s3 = inlined_call_operand.vmem [shape: f32[1,128], index: 3, kind: input, shape index: {}]   ;;  %s960_s4 = inlined_call_operand.hbm [shape: bf16[2,8,128], index: 4, kind: output, shape index: {}]  }
   0x1   :  { %11 = vsyncpa [#allocation4 + $0x1], 0  ;;  %s826_s15 = smov 0   ;;  %s828_s16 = smov 0  }
   0x2   :  { %s830_s17 = smov 0   ;;  %s832_s18 = smov 0  }
   0x3 LB: > { %s847_s19 = sadd.s32 4294967295, %s795_s18   ;;  %s599_s20 = sadd.s32 4294967294, %s795_s18   ;;  %s795_s18 = sphi %s832_s18, %s966_s18   ;;  %s791_s17 = sphi %s830_s17, %s965_s17   ;;  %s787_s16 = sphi %s828_s16, %s964_s16   ;;  %s783_s15 = sphi %s826_s15, %s963_s15  }
   0x4   : > { %s851_s21 = sadd.s32 1, %s795_s18   ;;  %s113_s22 = sadd.s32 1, %s791_s17 }
   0x5   : > { %s110_s23 = ssub.s32 %s795_s18, %s851_s21  ;;  %p123_p0 = scmp.ne.s32.totalorder %s791_s17, %s787_s16 }
   0x6   : > { %p111_p1 = scmp.eq.s32.totalorder %s110_s23, 0  ;;  %p124_p2 = scmp.eq.s32.totalorder %s847_s19, 1 }
   0x7   : > { %p129_p3 = scmp.ne.s32.totalorder %s787_s16, %s783_s15  ;;  %p130_p4 = scmp.eq.s32.totalorder %s599_s20, 1 }
   0x8   : > { %s862_s24 = scalar_select %p111_p1, %s791_s17, %s113_s22  }
   0x9   : > { %p864_p5 = por %p124_p2, %p123_p0  ;;  %p868_p6 = por %p130_p4, %p129_p3 }
   0xa   : > { %p602_p7 = scmp.ge.s32.totalorder %s795_s18, 1  ;;  %p164_p8 = scmp.lt.s32.totalorder %s795_s18, 3 }
   0xc   : > { %p165_p9 = pnand %p602_p7, %p164_p8 }
   0xd   : > { %p189_p10 = scmp.lt.s32.totalorder (!%p165_p9), %s847_s19, 1  ;;  %vm195_vm0 = vcmask (!%p165_p9), 155648   ;;  %vm222_vm1 = vcmask (!%p165_p9), 1044480   ;;  %v797_v0 = vmov (!%p165_p9), 0.0   ;;  %v730_v1 = vld [vmem:[%s957_s1 + $0x8] sm:$0x1f] (!%p165_p9)  }
   0xe   : > { %168 = sbr.rel (%p165_p9) target bundleno = 404 (0x194), region = 36  ;;  %196 = vst.msk [vmem:[#allocation2] sm:$0x1] (!%p165_p9), %vm195_vm0, %v797_v0  ;;  %197 = vst.msk [vmem:[#allocation2 + $0x9] sm:$0x1] (!%p165_p9), %vm195_vm0, %v797_v0  ;;  %636 = vmatprep.subr.bf16.mxu0 (!%p165_p9), %v797_v0  ;;  %654 = vmatprep.subr.bf16.mxu1 (!%p165_p9), %v797_v0  ;;  %v224_v2 = vsel (!%p165_p9), %vm222_vm1, %v730_v1, 0 }
   0xf   : > { %vm798_vm2 = vmmov (!%p165_p9), 0   ;;  %v731_v3 = vld [vmem:[%s957_s1] sm:$0x1f] (!%p165_p9)   ;;  %vm198_vm3 = vcmask (!%p165_p9), 162816   ;;  %637 = vmatpush3.bf16.msra.mxu0 (!%p165_p9), %v224_v2  ;;  %655 = vmatpush3.bf16.msra.mxu1 (!%p165_p9), %v224_v2  ;;  %vm218_vm4 = vcmask (!%p165_p9), 80896   ;;  %s799_s10 = smov (!%p165_p9), 118  }
  0x10   : > { %638 = vmatprep.mubr.msk.bf16.mxu0 (!%p165_p9), %vm798_vm2, %v797_v0  ;;  %656 = vmatprep.mubr.msk.bf16.mxu1 (!%p165_p9), %vm798_vm2, %v797_v0  ;;  %v278_v6 = vsel (!%p165_p9), %vm222_vm1, %v731_v3, 0  ;;  %v732_v10 = vld [vmem:[%s957_s1 + $0x10] sm:$0x1f] (!%p165_p9)   ;;  %v618_v15 = vld [vmem:[%s958_s2] ss:$0 sm:$0xff] (!%p165_p9)  ;;  %s186_s23 = sand.u32 (!%p165_p9), 1, %s787_s16  }
  0x11   : > { %642 = vmatprep.subr.bf16.mxu0 (!%p165_p9), %v797_v0  ;;  %660 = vmatprep.subr.bf16.mxu1 (!%p165_p9), %v797_v0  ;;  %v332_v11 = vsel (!%p165_p9), %vm222_vm1, %v732_v10, 0  ;;  %v619_v17 = vld [vmem:[%s959_s3] ss:$0 sm:$0xff] (!%p165_p9)  ;;  %s603_s27 = sshll.u32 (!%p165_p9), %s186_s23, 2  ;;  %s621_s28 = sshll.u32 (!%p165_p9), %s847_s19, 6 }
  0x12   : > { %s914_s7 = scalar_lea.hbm (!%p165_p9), %s960_s4, %s621_s28  ;;  %s527_s8 = scalar_lea.sflag (!%p165_p9), [#allocation4], %s186_s23 }
  0x15   : > { %s190_s29 = scalar_select %p189_p10, %s847_s19, 1 }
  0x16   : > { %s800_s19 = smov [#allocation3]  }
  0x17   : > { %s604_s6 = sshll.u32 %s190_s29, 3  ;;  %s188_s29 = scalar_lea.vmem [#allocation3], %s603_s27 }
  0x18   : > { %s192_s9 = scalar_lea.vmem %s956_s0, %s604_s6  ;;  %s540_s30 = sshll.u32 %s188_s29, 4  ;;  %s916_s30 = int_to_ptr.vmem [resolvable:$true] %s540_s30 }
  0x19   : > { %v194_v4 = vld [vmem:[%s192_s9] sm:$0xff]  ;;  %s733_s9 = scalar_lea.vmem %s916_s30, 64 }
  0x1a   : > { %v200_v5 = vpack.c.bf16 %v194_v4, %v194_v4  ;;  %199 = vst.msk [vmem:[#allocation2 + $0x1] sm:$0xff] %vm198_vm3, %v194_v4  ;;  %p734_p11 = scmp.ne.s32.totalorder %s916_s30, %s733_s9 }
  0x1c   : > { %321 = vrot.lane.b32.xlu0 %v200_v5, %s799_s10  ;;  %639 = vmatmul.mubr.msk.bf16.vlgmr.msra.gmra.mrb[0].mxu0 %vm218_vm4, %v200_v5  ;;  %p735_p12 = pnand %p734_p11, %p864_p5 }
  0x1d   : > { %643 = vmatpush3.bf16.msra.mxu0 %v278_v6  ;;  %644 = vmatprep.mubr.msk.bf16.mxu0 %vm798_vm2, %v797_v0 }
  0x1e   : > { %648 = vmatprep.subr.bf16.mxu0 %v797_v0  ;;  %p736_p13 = pneg %p735_p12 }
  0x21   : > { %v201_v7 = vld [vmem:[#allocation2] sm:$0xff] }
  0x22   : > { %v202_v8 = vpack.c.bf16 %v201_v7, %v201_v7  ;;  %v203_v13 = vld [vmem:[#allocation2 + $0x2] sm:$0xff] }
  0x23   : > { %v204_v14 = vpack.c.bf16 %v203_v13, %v203_v13 }
  0x24   : > { %267 = vrot.lane.b32.xlu0 %v202_v8, %s799_s10  ;;  %s737_s10 = sshll.u32 %s800_s19, 4  ;;  %s738_s10 = int_to_ptr.vmem [resolvable:$false] %s737_s10 }
  0x25   : > { %s739_s11 = scalar_lea.vmem %s738_s10, 128  ;;  %p740_p0 = scmp.lt.s32.totalorder %s916_s30, %s738_s10 }
  0x26   : > { %p741_p1 = scmp.lt.s32.totalorder %s739_s11, %s733_s9 }
  0x28   : > { %p742_p2 = por %p741_p1, %p740_p0 }
  0x2a   : > { %p743_p3 = pnand %p742_p2, %p736_p13 }
  0x8e   : > { %v322_v9 = vpop.permute.xlu0 %321 }
  0x8f   : > { %657 = vmatmul.mubr.msk.bf16.vlgmr.msra.gmra.mrb[0].mxu1 %vm218_vm4, %v322_v9 }
  0x90   : > { %661 = vmatpush3.bf16.msra.mxu1 %v278_v6  ;;  %662 = vmatprep.mubr.msk.bf16.mxu1 %vm798_vm2, %v797_v0 }
  0x91   : > { %666 = vmatprep.subr.bf16.mxu1 %v797_v0 }
  0x96   : > { %v268_v12 = vpop.permute.xlu0 %267 }
  0x97   : > { %645 = vmatmul.mubr.msk.bf16.vlgmr.msra.gmra.mrb[0].mxu0 %vm218_vm4, %v268_v12 }
  0x98   : > { %649 = vmatpush3.bf16.msra.mxu0 %v332_v11  ;;  %650 = vmatprep.mubr.msk.bf16.mxu0 %vm798_vm2, %v797_v0 }
  0x9b   : > { %663 = vmatmul.mubr.msk.bf16.vlgmr.msra.gmra.mrb[0].mxu1 %vm218_vm4, %v200_v5 }
  0x9c   : > { %667 = vmatpush3.bf16.msra.mxu1 %v332_v11  ;;  %668 = vmatprep.mubr.msk.bf16.mxu1 %vm798_vm2, %v797_v0 }
  0xa3   : > { %651 = vmatmul.mubr.msk.bf16.vlgmr.msra.gmra.mrb[0].mxu0 %vm218_vm4, %v322_v9 }
  0xa7   : > { %669 = vmatmul.mubr.msk.bf16.vlgmr.msra.gmra.mrb[0].mxu1 %vm218_vm4, %v204_v14 }
 0x176   : > { %v368_v16 = vpop.f32.mrb[0].mxu0 }
 0x177   : > { %v507_v18 = vmul.f32 %v618_v15, %v368_v16  ;;  %v652_v19 = vpop.f32.mrb[1].mxu0 }
 0x178   : > { %v371_v20 = vpop.f32.mrb[2].mxu0 }
 0x179   : > { %v514_v21 = vadd.f32 %v619_v17, %v507_v18  ;;  %v653_v22 = vpop.f32.mrb[3].mxu0 }
 0x17a   : > { %v492_v23 = vpop.f32.mrb[0].mxu1 }
 0x17b   : > { %v518_v24 = vmul.f32 %v618_v15, %v492_v23  ;;  %v670_v25 = vpop.f32.mrb[1].mxu1  ;;  %v516_v27 = vmul.f32 0.01, %v514_v21  ;;  %vm515_vm5 = vcmp.ge.f32.partialorder %v514_v21, 0.0 }
 0x17c   : > { %v495_v26 = vpop.f32.mrb[2].mxu1 }
 0x17d   : > { %v519_v28 = vadd.f32 %v619_v17, %v518_v24  ;;  %v671_v29 = vpop.f32.mrb[3].mxu1  ;;  %v517_v31 = vsel %vm515_vm5, %v514_v21, %v516_v27 }
 0x17f   : > { %vm520_vm6 = vcmp.ge.f32.partialorder %v519_v28, 0.0  ;;  %v521_v30 = vmul.f32 0.01, %v519_v28 }
 0x181   : > { %v522_v32 = vsel %vm520_vm6, %v519_v28, %v521_v30 }
 0x182   : > { %v523_v33 = vmax.f32 %v517_v31, %v522_v32 }
 0x184   : > { %v524_v34 = vpack.c.bf16 %v523_v33, %v523_v33 }
 0x186   : > { %525 = vst [vmem:[%s188_s29] sm:$0xf] %v524_v34 }
 0x187   : > { %746 = shalt.err (!%p743_p3)
}
 0x188   : > { %s747_s12 = scalar_lea.hbm %s914_s7, 64  ;;  %s751_s20 = scalar_lea.hbm %s960_s4, 128 }
 0x189   : > { %p748_p4 = scmp.ne.s32.totalorder %s914_s7, %s747_s12  ;;  %p752_p9 = scmp.lt.u32.totalorder %s914_s7, %s960_s4 }
 0x18a   : > { %p753_p10 = scmp.lt.u32.totalorder %s751_s20, %s747_s12  ;;  %p755_p12 = scmp.lt.u32.totalorder %s747_s12, %s914_s7 }
 0x18b   : > { %p749_p7 = pnand %p748_p4, %p864_p5 }
 0x18c   : > { %p754_p11 = por %p753_p10, %p752_p9 }
 0x18d   : > { %p750_p8 = pneg %p749_p7 }
 0x18e   : > { %p756_p13 = por %p755_p12, %p754_p11 }
 0x190   : > { %p757_p0 = pnand %p756_p13, %p750_p8 }
 0x192   : > { %760 = shalt.err (!%p757_p0)
}
 0x193   : > { %688 = dma.vmem_to_hbm [thread:$0]  (%p864_p5), %s916_s30, 64, %s914_s7, %s527_s8  }
 0x194 PF: > { %p694_p1 = scmp.ge.s32.totalorder %s795_s18, 2  ;;  %s552_s27 = sand.u32 1, %s783_s15  }
 0x195   : > { %s553_s28 = scalar_lea.sflag [#allocation4], %s552_s27 }
 0x196   : > { %p691_p2 = pnand %p694_p1, %p868_p6 }
 0x198   : > { %778 = dma.done.wait (!%p691_p2), %s553_s28, 64  }
 0x199   : > { %780 = vsyncadd (!%p691_p2), %s553_s28, 4294967232  ;;  %p14_p3 = scmp.ge.s32.totalorder %s851_s21, 4   ;;  %s963_s15 = smov %s787_s16 }
 0x19a   : > { %s964_s16 = smov %s791_s17  ;;  %s965_s17 = smov %s862_s24 }
 0x19b   : > { %s966_s18 = smov %s851_s21  ;;  %16 = sbr.rel (!%p14_p3) target bundleno = 3 (0x3), region = 73 }
 0x1a2   :  { %558 = vsyncpa [#allocation4], 1 }
 0x1a3   :  { %560 = vsyncpa [#allocation4 + $0x1], 1 }

</bundles_post_ra>
